<compile_context>
chip_gen: v7x
topology: tpu7x:2x2x1
jax: 0.10.0
libtpu: 0.0.40
codegen_flags: <defaults>
</compile_context>

<pallas_src>
import jax
import jax.numpy as jnp
from jax.experimental import pallas as pl
from jax.experimental.pallas import tpu as pltpu


def _ce_kernel(logits_ref, labels_ref, loss_ref):
    """Per-row cross entropy: loss[i] = logsumexp(logits[i]) - logits[i, label[i]]."""
    logits = logits_ref[...].astype(jnp.float32)            # (tm, C)
    labels = labels_ref[...]                                 # (tm, 1) int32

    # Numerically stable log-sum-exp.
    row_max = jnp.max(logits, axis=-1, keepdims=True)        # (tm, 1)
    shifted = logits - row_max                                # (tm, C)
    lse = jnp.log(jnp.sum(jnp.exp(shifted), axis=-1, keepdims=True))  # (tm, 1)

    # Pick the label logit straight from the raw logits (no onehot temporary,
    # no extra multiply): where-compare + lane reduction.
    cls_ids = jax.lax.broadcasted_iota(jnp.int32, logits.shape, dimension=1)
    picked = jnp.sum(jnp.where(cls_ids == labels, logits, 0.0),
                     axis=-1, keepdims=True)                  # (tm, 1)

    # logsumexp(logits) - logits[label]  ==  (row_max + lse) - picked
    loss_ref[...] = (row_max + lse) - picked


def _pick_row_tile(n_rows, n_classes, itemsize):
    """Row-tile so a double-buffered (tm, C) input tile stays ~<= 4 MiB/buffer."""
    target_bytes_per_buf = 4 * 1024 * 1024
    max_rows = max(8, target_bytes_per_buf // max(1, n_classes * itemsize))
    tm = min(512, max_rows, n_rows)
    if tm >= 8:
        tm = (tm // 8) * 8          # keep sublane tiling friendly
    else:
        tm = n_rows                  # tiny problems: one full-extent block
    return max(1, tm)


def per_sample_cross_entropy(logits, labels):
    """F.cross_entropy(logits, labels, reduction='none') via a tiled Pallas kernel."""
    N, C = logits.shape
    labels2d = labels.astype(jnp.int32).reshape(N, 1)

    tm = _pick_row_tile(N, C, logits.dtype.itemsize)
    n_blocks = pl.cdiv(N, tm)
    Np = n_blocks * tm

    if Np != N:
        # Pad rows so every grid block is full; padded rows are discarded below.
        logits = jnp.pad(logits, ((0, Np - N), (0, 0)))
        labels2d = jnp.pad(labels2d, ((0, Np - N), (0, 0)))

    bytes_accessed = Np * C * logits.dtype.itemsize + Np * 4 + Np * 4
    cost = pl.CostEstimate(
        flops=5 * Np * C,            # max/sub/exp-adjacent adds/compare/select
        transcendentals=Np * C + Np,  # exp per element + log per row
        bytes_accessed=bytes_accessed,
    )

    out = pl.pallas_call(
        _ce_kernel,
        out_shape=jax.ShapeDtypeStruct((Np, 1), jnp.float32),
        grid=(n_blocks,),
        in_specs=[
            pl.BlockSpec((tm, C), lambda i: (i, 0)),
            pl.BlockSpec((tm, 1), lambda i: (i, 0)),
        ],
        out_specs=pl.BlockSpec((tm, 1), lambda i: (i, 0)),
        compiler_params=pltpu.CompilerParams(
            dimension_semantics=("parallel",),   # megacore shard on v7x; no-op on v5e/v6e
            vmem_limit_bytes=32 << 20,           # safe on v5e/v6e/v7x with the tile choice above
        ),
        cost_estimate=cost,
    )(logits, labels2d)
    return out.reshape(Np)[:N]


def ct_loss(y_1, y_2, y_noise, forget_rate, ind, noise_or_not):
    """Co-teaching loss forward, matching CTLoss.forward semantics.

    Note: forget_rate must be a static Python float (matches the PyTorch
    module, which uses int(remember_rate * len(...)) eagerly).
    """
    N = y_1.shape[0]

    # Fused per-sample CE: one pallas_call over the stacked (2N, C) logits so a
    # single DMA pipeline covers both networks' predictions.
    logits_all = jnp.concatenate([y_1, y_2], axis=0)            # (2N, C)
    labels_all = jnp.concatenate([y_noise, y_noise], axis=0)    # (2N,)
    losses_all = per_sample_cross_entropy(logits_all, labels_all)
    loss_1 = losses_all[:N]
    loss_2 = losses_all[N:]

    # TODO(synk): argsort has no clean Pallas TPU equivalent; done with jnp.argsort glue.
    ind_1_sorted = jnp.argsort(loss_1)
    ind_2_sorted = jnp.argsort(loss_2)

    remember_rate = 1.0 - float(forget_rate)
    num_remember = int(remember_rate * N)

    ind_1_update = ind_1_sorted[:num_remember]
    ind_2_update = ind_2_sorted[:num_remember]

    # pure ratios: fraction of "clean" samples among the remembered set.
    pure_ratio_1 = jnp.sum(noise_or_not[ind[ind_1_update]]) / float(num_remember)
    pure_ratio_2 = jnp.sum(noise_or_not[ind[ind_2_update]]) / float(num_remember)

    # F.cross_entropy(y[sel], t[sel]) with default 'mean' reduction == mean of
    # the already-computed per-sample losses at those indices.
    loss_1_update = jnp.mean(loss_1[ind_2_update])
    loss_2_update = jnp.mean(loss_2[ind_1_update])

    batch_ind_noisy_1 = ind_1_sorted[num_remember:]
    batch_ind_noisy_2 = ind_2_sorted[num_remember:]

    return (loss_1_update, loss_2_update, pure_ratio_1, pure_ratio_2,
            batch_ind_noisy_1, batch_ind_noisy_2)


if __name__ == "__main__":
    key = jax.random.PRNGKey(0)
    k1, k2, k3, k4, k5 = jax.random.split(key, 5)

    batch = 16          # N samples in the batch
    num_classes = 8     # C classes
    dataset_size = 64   # size of the noise_or_not table
    forget_rate = 0.25  # -> num_remember = 12

    y_1 = jax.random.normal(k1, (batch, num_classes), dtype=jnp.float32)
    y_2 = jax.random.normal(k2, (batch, num_classes), dtype=jnp.float32)
    y_noise = jax.random.randint(k3, (batch,), 0, num_classes, dtype=jnp.int32)
    # Batch's dataset indices (distinct indices into the noise_or_not table).
    ind = jax.random.permutation(k4, dataset_size)[:batch].astype(jnp.int32)
    # 1.0 where the sample is clean, 0.0 where it is noisy.
    noise_or_not = jax.random.bernoulli(k5, 0.7, (dataset_size,)).astype(jnp.float32)

    outs = ct_loss(y_1, y_2, y_noise, forget_rate, ind, noise_or_not)
    outs = jax.tree_util.tree_map(jax.block_until_ready, outs)
    (loss_1_update, loss_2_update, pr1, pr2, noisy1, noisy2) = outs

    # Sanity checks against a pure-JAX reference of the CE hot path.
    ref_ce_1 = -jax.nn.log_softmax(y_1, axis=-1)[jnp.arange(batch), y_noise]
    ref_ce_2 = -jax.nn.log_softmax(y_2, axis=-1)[jnp.arange(batch), y_noise]
    ker_ce_1 = per_sample_cross_entropy(y_1, y_noise)
    ker_ce_2 = per_sample_cross_entropy(y_2, y_noise)
    assert jnp.allclose(ref_ce_1, ker_ce_1, atol=1e-5), "CE kernel mismatch (y_1)"
    assert jnp.allclose(ref_ce_2, ker_ce_2, atol=1e-5), "CE kernel mismatch (y_2)"

    # End-to-end cross-check of the fused path against a pure-JAX reference.
    ref_l1u = jnp.mean(ref_ce_1[jnp.argsort(ref_ce_2)[:12]])
    ref_l2u = jnp.mean(ref_ce_2[jnp.argsort(ref_ce_1)[:12]])
    assert jnp.allclose(loss_1_update, ref_l1u, atol=1e-5), "loss_1_update mismatch"
    assert jnp.allclose(loss_2_update, ref_l2u, atol=1e-5), "loss_2_update mismatch"

    print("KERNEL_OK")
</pallas_src>

<mosaic_0001>
module attributes {stable_mosaic.version = 11 : i64} {
  func.func @_ce_kernel(%arg0: i32, %arg1: memref<32x8xf32, #tpu.memory_space<vmem>>, %arg2: memref<32x1xi32, #tpu.memory_space<vmem>>, %arg3: memref<32x1xf32, #tpu.memory_space<vmem>>) attributes {dimension_semantics = [#tpu.dimension_semantics<parallel>], iteration_bounds = array<i64: 1>, scalar_prefetch = 0 : i64, scratch_operands = 0 : i64, tpu.core_type = #tpu.core_type<tc>, window_params = [{transform_indices = @transform_0, window_bounds = array<i64: 32, 8>}, {transform_indices = @transform_1, window_bounds = array<i64: 32, 1>}, {transform_indices = @transform_2, window_bounds = array<i64: 32, 1>}]} {
    %c0 = arith.constant 0 : index
    %c0_0 = arith.constant 0 : index
    %0 = vector.load %arg1[%c0, %c0_0] : memref<32x8xf32, #tpu.memory_space<vmem>>, vector<32x8xf32>
    %c0_1 = arith.constant 0 : index
    %c0_2 = arith.constant 0 : index
    %1 = vector.load %arg2[%c0_1, %c0_2] : memref<32x1xi32, #tpu.memory_space<vmem>>, vector<32x1xi32>
    %cst = arith.constant dense<0xFF800000> : vector<32xf32>
    %2 = vector.multi_reduction <maximumf>, %0, %cst [1] : vector<32x8xf32> to vector<32xf32>
    %3 = vector.shape_cast %2 : vector<32xf32> to vector<32x1xf32>
    %4 = vector.broadcast %3 : vector<32x1xf32> to vector<32x8xf32>
    %5 = arith.subf %0, %4 : vector<32x8xf32>
    %6 = math.exp %5 : vector<32x8xf32>
    %cst_3 = arith.constant dense<0.000000e+00> : vector<32xf32>
    %7 = vector.multi_reduction <add>, %6, %cst_3 [1] : vector<32x8xf32> to vector<32xf32>
    %8 = vector.shape_cast %7 : vector<32xf32> to vector<32x1xf32>
    %9 = math.log %8 : vector<32x1xf32>
    %10 = tpu.iota {dimensions = array<i32: 1>} : vector<32x8xi32>
    %11 = vector.broadcast %1 : vector<32x1xi32> to vector<32x8xi32>
    %12 = arith.cmpi eq, %10, %11 : vector<32x8xi32>
    %cst_4 = arith.constant 0.000000e+00 : f32
    %13 = vector.broadcast %cst_4 : f32 to vector<32x8xf32>
    %14 = arith.select %12, %0, %13 : vector<32x8xi1>, vector<32x8xf32>
    %cst_5 = arith.constant dense<0.000000e+00> : vector<32xf32>
    %15 = vector.multi_reduction <add>, %14, %cst_5 [1] : vector<32x8xf32> to vector<32xf32>
    %16 = vector.shape_cast %15 : vector<32xf32> to vector<32x1xf32>
    %17 = arith.addf %3, %9 : vector<32x1xf32>
    %18 = arith.subf %17, %16 : vector<32x1xf32>
    %c0_6 = arith.constant 0 : index
    %c0_7 = arith.constant 0 : index
    %19 = vector.load %arg3[%c0_6, %c0_7] : memref<32x1xf32, #tpu.memory_space<vmem>>, vector<32x1xf32>
    tpu.vector_store %arg3[%c0_6, %c0_7], %18 {strides = array<i32>} : memref<32x1xf32, #tpu.memory_space<vmem>>, vector<32x1xf32>,
    return
  }
  func.func @transform_0(%arg0: i32) -> (i32, i32) {
    %c0_i32 = arith.constant 0 : i32
    %c0_i32_0 = arith.constant 0 : i32
    return %arg0, %c0_i32 : i32, i32
  }
  func.func @transform_1(%arg0: i32) -> (i32, i32) {
    %c0_i32 = arith.constant 0 : i32
    %c0_i32_0 = arith.constant 0 : i32
    return %arg0, %c0_i32 : i32, i32
  }
  func.func @transform_2(%arg0: i32) -> (i32, i32) {
    %c0_i32 = arith.constant 0 : i32
    %c0_i32_0 = arith.constant 0 : i32
    return %arg0, %c0_i32 : i32, i32
  }
}

</mosaic_0001>

<bundles_post_ra>
// kernel: tpu_custom_call.1
= control target key start
LH: loop header
LB: loop body
LE: loop exit
PB: predicated region body
PF: predicated region fallthrough
CT: control target
= control target key end

     0   :  { %vm19_vm0 = vcmask 64512   ;;  %v134_v3 = vmov 0   ;;  %v64_v26 = vlaneseq  ;;  %vm106_vm5 = vcmask 7168   ;;  %s224_s0 = inlined_call_operand.vmem [shape: f32[32,8], index: 0, kind: input, shape index: {}]   ;;  %s225_s1 = inlined_call_operand.vmem [shape: s32[32,1], index: 1, kind: input, shape index: {}]   ;;  %s226_s2 = inlined_call_operand.vmem [shape: f32[32,1], index: 2, kind: output, shape index: {}]  }
   0x1   :  { %v11_v0 = vld [vmem:[%s224_s0] sm:$0xff]  ;;  %v13_v1 = vld [vmem:[%s224_s0 + $0x10] sm:$0xff]  ;;  %v159_v2 = vld [vmem:[%s224_s0 + $0x8] sm:$0xff]  ;;  %117 = vset.pattern.permute.xlu1 %v134_v3  ;;  %116 = vset.pattern.permute.xlu0 %v134_v3 }
   0x2   :  { %v20_v4 = vsel %vm19_vm0, %v11_v0, -inf  ;;  %v26_v5 = vsel %vm19_vm0, %v13_v1, -inf  ;;  %v166_v6 = vld [vmem:[%s224_s0 + $0x18] sm:$0xff]  ;;  %v23_v7 = vsel %vm19_vm0, %v159_v2, -inf  ;;  %v16_v9 = vld [vmem:[%s225_s1 + $0x8] sm:$0xff]  ;;  %v17_v10 = vld [vmem:[%s225_s1 + $0x10] sm:$0xff] }
   0x3   :  { %21 = vmax.xlane.f32.xlu0 %v20_v4  ;;  %27 = vmax.xlane.f32.xlu1 %v26_v5  ;;  %v29_v8 = vsel %vm19_vm0, %v166_v6, -inf  ;;  %v15_v11 = vld [vmem:[%s225_s1] sm:$0xff]  ;;  %v18_v12 = vld [vmem:[%s225_s1 + $0x18] sm:$0xff]  ;;  %v65_v27 = vand.u32 127, %v64_v26 }
   0x7   :  { %24 = vmax.xlane.f32.xlu0 %v23_v7  ;;  %30 = vmax.xlane.f32.xlu1 %v29_v8 }
  0x18   :  { %70 = vperm.xlu1 %117, %v16_v9  }
  0x1c   :  { %73 = vperm.xlu1 %117, %v17_v10  }
  0x1d   :  { %67 = vperm.xlu0 %116, %v15_v11  }
  0x20   :  { %76 = vperm.xlu1 %117, %v18_v12  }
  0x90   :  { %v22_v13 = vpop.xlane.xlu0 %21  ;;  %v184_v14 = vpop.xlane.xlu1 %27 }
  0x91   :  { %v32_v15 = vsub.f32 %v11_v0, %v22_v13  ;;  %v34_v16 = vsub.f32 %v13_v1, %v184_v14 }
  0x93   :  { %v36_v17 = vmul.f32 1.442695, %v32_v15  ;;  %v40_v18 = vmul.f32 1.442695, %v34_v16 }
  0x94   :  { %v187_v19 = vpop.xlane.xlu0 %24  ;;  %v189_v20 = vpop.xlane.xlu1 %30 }
  0x95   :  { %118 = vpow2.f32 %v36_v17  ;;  %v33_v21 = vsub.f32 %v159_v2, %v187_v19  ;;  %v35_v22 = vsub.f32 %v166_v6, %v189_v20 }
  0x96   :  { %120 = vpow2.f32 %v40_v18 }
  0x97   :  { %v38_v23 = vmul.f32 1.442695, %v33_v21  ;;  %v42_v24 = vmul.f32 1.442695, %v35_v22 }
  0x98   :  { %v71_v25 = vpop.permute.xlu1 %70 }
  0x99   :  { %122 = vpow2.f32 %v38_v23  ;;  %vm79_vm3 = vcmp.eq.s32.totalorder %v65_v27, %v71_v25 }
  0x9a   :  { %124 = vpow2.f32 %v42_v24  ;;  %v83_v43 = vsel %vm79_vm3, %v159_v2, 0.0 }
  0x9b   :  { %v89_v44 = vsel %vm19_vm0, %v83_v43, 0.0 }
  0x9c   :  { %v74_v29 = vpop.permute.xlu1 %73  ;;  %v68_v32 = vpop.permute.xlu0 %67 }
  0x9d   :  { %vm80_vm1 = vcmp.eq.s32.totalorder %v65_v27, %v74_v29  ;;  %vm78_vm2 = vcmp.eq.s32.totalorder %v65_v27, %v68_v32 }
  0x9e   :  { %v84_v35 = vsel %vm80_vm1, %v13_v1, 0.0  ;;  %v82_v40 = vsel %vm78_vm2, %v11_v0, 0.0 }
  0x9f   :  { %v119_v28 = vpop.eup %118  ;;  %v92_v39 = vsel %vm19_vm0, %v84_v35, 0.0  ;;  %v86_v41 = vsel %vm19_vm0, %v82_v40, 0.0 }
  0xa0   :  { %v121_v30 = vpop.eup %120  ;;  %v44_v31 = vsel %vm19_vm0, %v119_v28, 0.0  ;;  %v77_v42 = vpop.permute.xlu1 %76 }
  0xa1   :  { %45 = vadd.xlane.f32.xlu1 %v44_v31  ;;  %v50_v33 = vsel %vm19_vm0, %v121_v30, 0.0  ;;  %vm81_vm4 = vcmp.eq.s32.totalorder %v65_v27, %v77_v42 }
  0xa2   :  { %v85_v45 = vsel %vm81_vm4, %v166_v6, 0.0 }
  0xa3   :  { %v123_v34 = vpop.eup %122  ;;  %v95_v46 = vsel %vm19_vm0, %v85_v45, 0.0 }
  0xa4   :  { %v125_v36 = vpop.eup %124  ;;  %v47_v37 = vsel %vm19_vm0, %v123_v34, 0.0 }
  0xa5   :  { %51 = vadd.xlane.f32.xlu1 %v50_v33  ;;  %48 = vadd.xlane.f32.xlu0 %v47_v37  ;;  %v53_v38 = vsel %vm19_vm0, %v125_v36, 0.0 }
  0xa9   :  { %54 = vadd.xlane.f32.xlu1 %v53_v38  ;;  %93 = vadd.xlane.f32.xlu0 %v92_v39 }
  0xad   :  { %87 = vadd.xlane.f32.xlu1 %v86_v41 }
  0xb1   :  { %90 = vadd.xlane.f32.xlu1 %v89_v44 }
  0xb5   :  { %96 = vadd.xlane.f32.xlu1 %v95_v46 }
 0x12e   :  { %v46_v47 = vpop.xlane.xlu1 %45 }
 0x12f   :  { %126 = vlog2.f32 %v46_v47 }
 0x132   :  { %v52_v48 = vpop.xlane.xlu1 %51  ;;  %v49_v49 = vpop.xlane.xlu0 %48 }
 0x133   :  { %128 = vlog2.f32 %v52_v48 }
 0x134   :  { %130 = vlog2.f32 %v49_v49 }
 0x136   :  { %v55_v50 = vpop.xlane.xlu1 %54  ;;  %v94_v63 = vpop.xlane.xlu0 %93 }
 0x137   :  { %132 = vlog2.f32 %v55_v50 }
 0x139   :  { %v127_v51 = vpop.eup %126 }
 0x13a   :  { %v57_v52 = vmul.f32 0.6931472, %v127_v51  ;;  %v88_v53 = vpop.xlane.xlu1 %87 }
 0x13c   :  { %v98_v54 = vadd.f32 %v57_v52, %v22_v13 }
 0x13d   :  { %v129_v55 = vpop.eup %128 }
 0x13e   :  { %v131_v56 = vpop.eup %130  ;;  %v61_v57 = vmul.f32 0.6931472, %v129_v55  ;;  %v102_v58 = vsub.f32 %v98_v54, %v88_v53  ;;  %v91_v60 = vpop.xlane.xlu1 %90 }
 0x13f   :  { %v59_v59 = vmul.f32 0.6931472, %v131_v56 }
 0x140   :  { %107 = vst.msk [vmem:[%s226_s2] sm:$0xff] %vm106_vm5, %v102_v58  ;;  %v100_v61 = vadd.f32 %v61_v57, %v184_v14 }
 0x141   :  { %v133_v62 = vpop.eup %132  ;;  %v99_v0 = vadd.f32 %v59_v59, %v187_v19 }
 0x142   :  { %v63_v1 = vmul.f32 0.6931472, %v133_v62  ;;  %v104_v2 = vsub.f32 %v100_v61, %v94_v63  ;;  %v97_v5 = vpop.xlane.xlu1 %96 }
 0x143   :  { %v103_v3 = vsub.f32 %v99_v0, %v91_v60 }
 0x144   :  { %109 = vst.msk [vmem:[%s226_s2 + $0x10] sm:$0xff] %vm106_vm5, %v104_v2  ;;  %v101_v4 = vadd.f32 %v63_v1, %v189_v20 }
 0x145   :  { %108 = vst.msk [vmem:[%s226_s2 + $0x8] sm:$0xff] %vm106_vm5, %v103_v3 }
 0x146   :  { %v105_v6 = vsub.f32 %v101_v4, %v97_v5 }
 0x148   :  { %110 = vst.msk [vmem:[%s226_s2 + $0x18] sm:$0xff] %vm106_vm5, %v105_v6 }

</bundles_post_ra>
